<compile_context>
chip_gen: v6e
topology: v6e:2x2x1
jax: 0.10.0
libtpu: 0.0.40
codegen_flags: <defaults>
</compile_context>

<pallas_src>
import math

import jax
import jax.numpy as jnp
from jax.experimental import pallas as pl
from jax.experimental.pallas import tpu as pltpu

_LANE = 128  # lane width / MXU column alignment


def _round_up(v, m):
    return ((v + m - 1) // m) * m


def overparam_kernel(x_ref, wc_ref, wf_ref, bc_ref, bf_ref, o_ref):
    # x_ref: (TM, N), wc_ref/wf_ref: (N, N), bc_ref/bf_ref: (1, N), o_ref: (TM, N)
    x = x_ref[...]
    c = jnp.dot(x, wc_ref[...], preferred_element_type=jnp.float32) + bc_ref[...]
    f = jnp.dot(x, wf_ref[...], preferred_element_type=jnp.float32) + bf_ref[...]
    o_ref[...] = (jax.nn.sigmoid(f) * jnp.tanh(c)).astype(o_ref.dtype)


def overparam(x, w, b, *, tm=512):
    """x: (..., nhid); w: (nhid, 2*nhid) (pre-transposed Linear weight);
    b: (2*nhid,).  Returns (..., nhid)."""
    nhid = x.shape[-1]
    lead = x.shape[:-1]
    m = math.prod(lead) if lead else 1

    # Split weight / bias into the c (tanh) and f (sigmoid) halves in the
    # wrapper so the kernel never slices along the lane dimension.
    w_c, w_f = w[:, :nhid], w[:, nhid:]
    b_c = b[:nhid].reshape(1, nhid)
    b_f = b[nhid:].reshape(1, nhid)

    # Lane-dense padding: pad the feature dim up to a multiple of 128.
    # Zero-padded input columns / weight rows contribute nothing to the
    # matmul; padded output columns are sliced off below.
    n_pad = _round_up(nhid, _LANE)
    if n_pad != nhid:
        dk = n_pad - nhid
        x = jnp.pad(x, [(0, 0)] * len(lead) + [(0, dk)])
        w_c = jnp.pad(w_c, ((0, dk), (0, dk)))
        w_f = jnp.pad(w_f, ((0, dk), (0, dk)))
        b_c = jnp.pad(b_c, ((0, 0), (0, dk)))
        b_f = jnp.pad(b_f, ((0, 0), (0, dk)))

    x2 = x.reshape(m, n_pad)

    # Row tiling: TM a multiple of 8, M padded up to a TM multiple so the
    # grid divides evenly.  Padded rows are sliced off after the call.
    tm = max(8, min(tm, _round_up(m, 8)))
    m_pad = _round_up(m, tm)
    if m_pad != m:
        x2 = jnp.pad(x2, ((0, m_pad - m), (0, 0)))

    grid = (m_pad // tm,)

    # Scoped-VMEM budget: double-buffered x/out tiles, resident (but still
    # double-buffered by the pipeliner) weights + bias, plus f32 c/f
    # intermediates.  Clamped to 64 MiB so it is valid on every generation
    # (v7x has 64 MiB per TensorCore).
    xb = x2.dtype.itemsize
    wb = w_c.dtype.itemsize
    vmem_bytes = (
        2 * tm * n_pad * xb          # x tiles (double-buffered)
        + 2 * tm * n_pad * xb        # out tiles (double-buffered)
        + 2 * 2 * n_pad * n_pad * wb # w_c, w_f
        + 2 * 2 * n_pad * wb         # b_c, b_f
        + 4 * tm * n_pad * 4         # f32 c/f intermediates + headroom
        + (2 << 20)                  # slack
    )
    vmem_bytes = int(min(vmem_bytes, 64 << 20))

    # TODO(synk): for very large nhid (weight > VMEM budget) add an N grid
    # axis over the output columns (and a K axis + f32 accumulator if nhid
    # itself is huge); weights are kept fully VMEM-resident here.

    out = pl.pallas_call(
        overparam_kernel,
        out_shape=jax.ShapeDtypeStruct((m_pad, n_pad), x.dtype),
        grid=grid,
        in_specs=[
            pl.BlockSpec((tm, n_pad), lambda i: (i, 0)),      # x tile
            pl.BlockSpec((n_pad, n_pad), lambda i: (0, 0)),   # w_c (resident)
            pl.BlockSpec((n_pad, n_pad), lambda i: (0, 0)),   # w_f (resident)
            pl.BlockSpec((1, n_pad), lambda i: (0, 0)),       # b_c
            pl.BlockSpec((1, n_pad), lambda i: (0, 0)),       # b_f
        ],
        out_specs=pl.BlockSpec((tm, n_pad), lambda i: (i, 0)),
        compiler_params=pltpu.CompilerParams(
            dimension_semantics=("parallel",),
            vmem_limit_bytes=vmem_bytes,
        ),
    )(x2, w_c, w_f, b_c, b_f)

    out = out[:m, :nhid]
    return out.reshape(*lead, nhid)


if __name__ == "__main__":
    nhid = 32
    batch, seq = 2, 8

    key = jax.random.PRNGKey(0)
    kx, kw, kb = jax.random.split(key, 3)

    # Deterministic parameter init (shapes match nn.Linear(nhid, 2*nhid)):
    #   weight: (2*nhid, nhid), bias: (2*nhid,).  Pre-transpose the weight to
    #   (nhid, 2*nhid) so the kernel computes x @ w directly.
    bound = 1.0 / math.sqrt(nhid)
    w_t = jax.random.uniform(kw, (2 * nhid, nhid), jnp.float32, -bound, bound)
    b = jax.random.uniform(kb, (2 * nhid,), jnp.float32, -bound, bound)
    w = w_t.T  # (nhid, 2*nhid)

    x = jax.random.normal(kx, (batch, seq, nhid), jnp.float32)

    out = overparam(x, w, b)
    out = jax.block_until_ready(out)

    # Pure-JAX reference check.
    y_ref = x @ w + b
    c_ref, f_ref = y_ref[..., :nhid], y_ref[..., nhid:]
    ref = jax.nn.sigmoid(f_ref) * jnp.tanh(c_ref)
    assert out.shape == (batch, seq, nhid)
    assert jnp.allclose(out, ref, atol=1e-5, rtol=1e-5)

    print("KERNEL_OK")
</pallas_src>

<mosaic_0001>
module attributes {stable_mosaic.version = 11 : i64} {
  func.func @overparam_kernel(%arg0: i32, %arg1: memref<16x128xf32, #tpu.memory_space<vmem>>, %arg2: memref<128x128xf32, #tpu.memory_space<vmem>>, %arg3: memref<128x128xf32, #tpu.memory_space<vmem>>, %arg4: memref<1x128xf32, #tpu.memory_space<vmem>>, %arg5: memref<1x128xf32, #tpu.memory_space<vmem>>, %arg6: memref<16x128xf32, #tpu.memory_space<vmem>>) attributes {dimension_semantics = [#tpu.dimension_semantics<parallel>], iteration_bounds = array<i64: 1>, scalar_prefetch = 0 : i64, scratch_operands = 0 : i64, tpu.core_type = #tpu.core_type<tc>, window_params = [{transform_indices = @transform_0, window_bounds = array<i64: 16, 128>}, {pipeline_mode = #tpu.pipeline_mode<synchronous>, transform_indices = @transform_1, window_bounds = array<i64: 128, 128>}, {pipeline_mode = #tpu.pipeline_mode<synchronous>, transform_indices = @transform_2, window_bounds = array<i64: 128, 128>}, {pipeline_mode = #tpu.pipeline_mode<synchronous>, transform_indices = @transform_3, window_bounds = array<i64: 1, 128>}, {pipeline_mode = #tpu.pipeline_mode<synchronous>, transform_indices = @transform_4, window_bounds = array<i64: 1, 128>}, {transform_indices = @transform_5, window_bounds = array<i64: 16, 128>}]} {
    %c0 = arith.constant 0 : index
    %c0_0 = arith.constant 0 : index
    %0 = vector.load %arg1[%c0, %c0_0] : memref<16x128xf32, #tpu.memory_space<vmem>>, vector<16x128xf32>
    %c0_1 = arith.constant 0 : index
    %c0_2 = arith.constant 0 : index
    %1 = vector.load %arg2[%c0_1, %c0_2] : memref<128x128xf32, #tpu.memory_space<vmem>>, vector<128x128xf32>
    %cst = arith.constant dense<0.000000e+00> : vector<16x128xf32>
    %2 = tpu.matmul %0, %1, %cst {dimension_numbers = #tpu.dot_dimension_numbers<[1], [0], [0], [1], [0, 0, 1, 1], [], []>} : vector<16x128xf32>, vector<128x128xf32>, vector<16x128xf32> -> vector<16x128xf32>
    %c0_3 = arith.constant 0 : index
    %c0_4 = arith.constant 0 : index
    %3 = vector.load %arg4[%c0_3, %c0_4] : memref<1x128xf32, #tpu.memory_space<vmem>>, vector<1x128xf32>
    %4 = vector.broadcast %3 : vector<1x128xf32> to vector<16x128xf32>
    %5 = arith.addf %2, %4 : vector<16x128xf32>
    %c0_5 = arith.constant 0 : index
    %c0_6 = arith.constant 0 : index
    %6 = vector.load %arg3[%c0_5, %c0_6] : memref<128x128xf32, #tpu.memory_space<vmem>>, vector<128x128xf32>
    %cst_7 = arith.constant dense<0.000000e+00> : vector<16x128xf32>
    %7 = tpu.matmul %0, %6, %cst_7 {dimension_numbers = #tpu.dot_dimension_numbers<[1], [0], [0], [1], [0, 0, 1, 1], [], []>} : vector<16x128xf32>, vector<128x128xf32>, vector<16x128xf32> -> vector<16x128xf32>
    %c0_8 = arith.constant 0 : index
    %c0_9 = arith.constant 0 : index
    %8 = vector.load %arg5[%c0_8, %c0_9] : memref<1x128xf32, #tpu.memory_space<vmem>>, vector<1x128xf32>
    %9 = vector.broadcast %8 : vector<1x128xf32> to vector<16x128xf32>
    %10 = arith.addf %7, %9 : vector<16x128xf32>
    %11 = arith.negf %10 : vector<16x128xf32>
    %12 = math.exp %11 : vector<16x128xf32>
    %cst_10 = arith.constant 1.000000e+00 : f32
    %13 = vector.broadcast %cst_10 : f32 to vector<16x128xf32>
    %14 = arith.addf %13, %12 : vector<16x128xf32>
    %15 = arith.divf %13, %14 : vector<16x128xf32>
    %16 = math.tanh %5 : vector<16x128xf32>
    %17 = arith.mulf %15, %16 : vector<16x128xf32>
    %c0_11 = arith.constant 0 : index
    %c0_12 = arith.constant 0 : index
    %18 = vector.load %arg6[%c0_11, %c0_12] : memref<16x128xf32, #tpu.memory_space<vmem>>, vector<16x128xf32>
    tpu.vector_store %arg6[%c0_11, %c0_12], %17 {strides = array<i32>} : memref<16x128xf32, #tpu.memory_space<vmem>>, vector<16x128xf32>,
    return
  }
  func.func @transform_0(%arg0: i32) -> (i32, i32) {
    %c0_i32 = arith.constant 0 : i32
    %c0_i32_0 = arith.constant 0 : i32
    return %arg0, %c0_i32 : i32, i32
  }
  func.func @transform_1(%arg0: i32) -> (i32, i32) {
    %c0_i32 = arith.constant 0 : i32
    %c0_i32_0 = arith.constant 0 : i32
    %c0_i32_1 = arith.constant 0 : i32
    return %c0_i32, %c0_i32_0 : i32, i32
  }
  func.func @transform_2(%arg0: i32) -> (i32, i32) {
    %c0_i32 = arith.constant 0 : i32
    %c0_i32_0 = arith.constant 0 : i32
    %c0_i32_1 = arith.constant 0 : i32
    return %c0_i32, %c0_i32_0 : i32, i32
  }
  func.func @transform_3(%arg0: i32) -> (i32, i32) {
    %c0_i32 = arith.constant 0 : i32
    %c0_i32_0 = arith.constant 0 : i32
    %c0_i32_1 = arith.constant 0 : i32
    return %c0_i32, %c0_i32_0 : i32, i32
  }
  func.func @transform_4(%arg0: i32) -> (i32, i32) {
    %c0_i32 = arith.constant 0 : i32
    %c0_i32_0 = arith.constant 0 : i32
    %c0_i32_1 = arith.constant 0 : i32
    return %c0_i32, %c0_i32_0 : i32, i32
  }
  func.func @transform_5(%arg0: i32) -> (i32, i32) {
    %c0_i32 = arith.constant 0 : i32
    %c0_i32_0 = arith.constant 0 : i32
    return %arg0, %c0_i32 : i32, i32
  }
}

</mosaic_0001>

<bundles_post_ra>
// kernel: tpu_custom_call.1
= control target key start
LH: loop header
LB: loop body
LE: loop exit
PB: predicated region body
PF: predicated region fallthrough
CT: control target
= control target key end

     0   :  { %10 = vsyncpa [#allocation3], 0  ;;  %s576_s0 = inlined_call_operand.hbm [shape: f32[16,128], index: 0, kind: input, shape index: {}]   ;;  %s577_s1 = inlined_call_operand.hbm [shape: f32[128,128], index: 1, kind: input, shape index: {}]   ;;  %s578_s2 = inlined_call_operand.hbm [shape: f32[128,128], index: 2, kind: input, shape index: {}]   ;;  %s579_s3 = inlined_call_operand.vmem [shape: f32[1,128], index: 3, kind: input, shape index: {}]   ;;  %s580_s4 = inlined_call_operand.vmem [shape: f32[1,128], index: 4, kind: input, shape index: {}]   ;;  %s581_s5 = inlined_call_operand.hbm [shape: f32[16,128], index: 5, kind: output, shape index: {}]  }
   0x1   :  { %11 = vsyncpa [#allocation6], 0 }
   0x2   :  { %12 = vsyncpa [#allocation4], 0  ;;  %s510_s18 = smov [#allocation5]   ;;  %s511_s20 = smov [#allocation2]  }
   0x3   :  { %s30_s19 = sshll.u32 %s510_s18, 4  ;;  %s18_s21 = sshll.u32 %s511_s20, 4  ;;  %s31_s19 = int_to_ptr.vmem [resolvable:$true] %s30_s19  ;;  %s19_s21 = int_to_ptr.vmem [resolvable:$true] %s18_s21 }
   0x4   :  { %s432_s22 = scalar_lea.vmem %s31_s19, 2048  ;;  %p437_p1 = scmp.lt.s32.totalorder %s31_s19, %s31_s19 }
   0x5   :  { %p433_p0 = scmp.ne.s32.totalorder %s31_s19, %s432_s22  ;;  %p438_p2 = scmp.lt.s32.totalorder %s432_s22, %s432_s22 }
   0x7   :  { %p439_p3 = por %p438_p2, %p437_p1 }
   0x9   :  { %p440_p4 = pnand %p439_p3, %p433_p0 }
   0xb   :  { %443 = shalt.err (!%p440_p4)
}
   0xc   :  { %s512_s23 = smov 128   ;;  %s513_s24 = smov 8  }
   0xd   :  { %36 = dma.hbm_to_vmem [thread:$0]  %s577_s1, 2048, %s31_s19, [#allocation6], %s512_s23, %s512_s23, %s513_s24  }
   0xe   :  { %s452_s27 = scalar_lea.vmem %s19_s21, 256  ;;  %p457_p6 = scmp.lt.s32.totalorder %s19_s21, %s19_s21 }
   0xf   :  { %p453_p5 = scmp.ne.s32.totalorder %s19_s21, %s452_s27  ;;  %p458_p7 = scmp.lt.s32.totalorder %s452_s27, %s452_s27 }
  0x11   :  { %p459_p8 = por %p458_p7, %p457_p6 }
  0x13   :  { %p460_p9 = pnand %p459_p8, %p453_p5 }
  0x15   :  { %463 = shalt.err (!%p460_p9)
}
  0x16   :  { %24 = dma.hbm_to_vmem [thread:$0]  %s576_s0, 256, %s19_s21, [#allocation3], %s512_s23, %s512_s23, %s513_s24  }
  0x17   :  { %s514_s30 = smov [#allocation7]  }
  0x18   :  { %s42_s6 = sshll.u32 %s514_s30, 4  ;;  %s43_s6 = int_to_ptr.vmem [resolvable:$true] %s42_s6 }
  0x19   :  { %s472_s7 = scalar_lea.vmem %s43_s6, 2048  ;;  %p477_p11 = scmp.lt.s32.totalorder %s43_s6, %s43_s6 }
  0x1a   :  { %p473_p10 = scmp.ne.s32.totalorder %s43_s6, %s472_s7  ;;  %p478_p12 = scmp.lt.s32.totalorder %s472_s7, %s472_s7 }
  0x1c   :  { %p479_p13 = por %p478_p12, %p477_p11 }
  0x1e   :  { %p480_p0 = pnand %p479_p13, %p473_p10 }
  0x20   :  { %483 = shalt.err (!%p480_p0)
}
  0x21   :  { %48 = dma.hbm_to_vmem [thread:$0]  %s578_s2, 2048, %s43_s6, [#allocation6], %s512_s23, %s512_s23, %s513_s24  }
  0x22   :  { %504 = dma.done.wait [#allocation3], 256  }
  0x23   :  { %505 = vsyncadd [#allocation3], 4294967040 }
  0x24   :  { %506 = dma.done.wait [#allocation6], 4096  }
  0x25   :  { %507 = vsyncadd [#allocation6], 4294963200  ;;  %v177_v0 = vld [vmem:[#allocation7 + $0x78] sm:$0xff]  ;;  %v176_v1 = vld [vmem:[#allocation7 + $0x70] sm:$0xff] }
  0x26   :  { %371 = vmatprep.subr.mxu1 %v177_v0  ;;  %v175_v2 = vld [vmem:[#allocation7 + $0x68] sm:$0xff]  ;;  %v79_v3 = vld [vmem:[#allocation5 + $0x78] sm:$0xff]  ;;  %v78_v4 = vld [vmem:[#allocation5 + $0x70] sm:$0xff] }
  0x27   :  { %372 = vmatpush3.msra.mxu1 %v177_v0  ;;  %336 = vmatprep.subr.mxu0 %v79_v3  ;;  %v174_v5 = vld [vmem:[#allocation7 + $0x60] sm:$0xff]  ;;  %v77_v6 = vld [vmem:[#allocation5 + $0x68] sm:$0xff]  ;;  %v173_v7 = vld [vmem:[#allocation7 + $0x58] sm:$0xff] }
  0x28   :  { %373 = vmatprep.subr.mxu1 %v176_v1  ;;  %337 = vmatpush3.msra.mxu0 %v79_v3  ;;  %v76_v8 = vld [vmem:[#allocation5 + $0x60] sm:$0xff]  ;;  %v172_v9 = vld [vmem:[#allocation7 + $0x50] sm:$0xff]  ;;  %v75_v10 = vld [vmem:[#allocation5 + $0x58] sm:$0xff] }
  0x29   :  { %374 = vmatpush3.msra.mxu1 %v176_v1  ;;  %338 = vmatprep.subr.mxu0 %v78_v4  ;;  %v171_v11 = vld [vmem:[#allocation7 + $0x48] sm:$0xff]  ;;  %v74_v12 = vld [vmem:[#allocation5 + $0x50] sm:$0xff]  ;;  %v170_v13 = vld [vmem:[#allocation7 + $0x40] sm:$0xff] }
  0x2a   :  { %375 = vmatprep.subr.mxu1 %v175_v2  ;;  %339 = vmatpush3.msra.mxu0 %v78_v4  ;;  %v73_v14 = vld [vmem:[#allocation5 + $0x48] sm:$0xff]  ;;  %v169_v15 = vld [vmem:[#allocation7 + $0x38] sm:$0xff]  ;;  %v72_v16 = vld [vmem:[#allocation5 + $0x40] sm:$0xff] }
  0x2b   :  { %376 = vmatpush3.msra.mxu1 %v175_v2  ;;  %340 = vmatprep.subr.mxu0 %v77_v6  ;;  %v168_v17 = vld [vmem:[#allocation7 + $0x30] sm:$0xff]  ;;  %v71_v19 = vld [vmem:[#allocation5 + $0x38] sm:$0xff]  ;;  %v167_v20 = vld [vmem:[#allocation7 + $0x28] sm:$0xff] }
  0x2c   :  { %377 = vmatprep.subr.mxu1 %v174_v5  ;;  %341 = vmatpush3.msra.mxu0 %v77_v6  ;;  %v62_v18 = vld [vmem:[#allocation2] sm:$0xff]  ;;  %v166_v22 = vld [vmem:[#allocation7 + $0x20] sm:$0xff]  ;;  %v69_v23 = vld [vmem:[#allocation5 + $0x28] sm:$0xff] }
  0x2d   :  { %378 = vmatpush3.msra.mxu1 %v174_v5  ;;  %342 = vmatprep.subr.mxu0 %v76_v8  ;;  %v70_v21 = vld [vmem:[#allocation5 + $0x30] sm:$0xff]  ;;  %v165_v24 = vld [vmem:[#allocation7 + $0x18] sm:$0xff]  ;;  %v68_v25 = vld [vmem:[#allocation5 + $0x20] sm:$0xff] }
  0x2e   :  { %379 = vmatprep.subr.mxu1 %v173_v7  ;;  %343 = vmatpush3.msra.mxu0 %v76_v8  ;;  %v164_v26 = vld [vmem:[#allocation7 + $0x10] sm:$0xff]  ;;  %v67_v27 = vld [vmem:[#allocation5 + $0x18] sm:$0xff]  ;;  %v163_v28 = vld [vmem:[#allocation7 + $0x8] sm:$0xff] }
  0x2f   :  { %380 = vmatpush3.msra.mxu1 %v173_v7  ;;  %344 = vmatprep.subr.mxu0 %v75_v10  ;;  %v66_v29 = vld [vmem:[#allocation5 + $0x10] sm:$0xff]  ;;  %v162_v30 = vld [vmem:[#allocation7] sm:$0xff]  ;;  %v65_v31 = vld [vmem:[#allocation5 + $0x8] sm:$0xff] }
  0x30   :  { %381 = vmatprep.subr.mxu1 %v172_v9  ;;  %345 = vmatpush3.msra.mxu0 %v75_v10  ;;  %v63_v32 = vld [vmem:[#allocation2 + $0x8] sm:$0xff]  ;;  %v64_v33 = vld [vmem:[#allocation5] sm:$0xff]  ;;  %v297_v34 = vld [vmem:[%s580_s4] ss:$0 sm:$0xff]  ;;  %s515_s4 = smov [#allocation8]  }
  0x31   :  { %382 = vmatpush3.msra.mxu1 %v172_v9  ;;  %346 = vmatprep.subr.mxu0 %v74_v12  ;;  %v296_v42 = vld [vmem:[%s579_s3] ss:$0 sm:$0xff]  ;;  %s283_s11 = sshll.u32 %s515_s4, 4  ;;  %s284_s11 = int_to_ptr.vmem [resolvable:$true] %s283_s11 }
  0x32   :  { %383 = vmatprep.subr.mxu1 %v171_v11  ;;  %347 = vmatpush3.msra.mxu0 %v74_v12  ;;  %s484_s3 = scalar_lea.vmem %s284_s11, 256  ;;  %p489_p2 = scmp.lt.s32.totalorder %s284_s11, %s284_s11 }
  0x33   :  { %384 = vmatpush3.msra.mxu1 %v171_v11  ;;  %348 = vmatprep.subr.mxu0 %v73_v14  ;;  %p485_p1 = scmp.ne.s32.totalorder %s284_s11, %s484_s3  ;;  %p490_p3 = scmp.lt.s32.totalorder %s484_s3, %s484_s3 }
  0x34   :  { %385 = vmatprep.subr.mxu1 %v170_v13  ;;  %349 = vmatpush3.msra.mxu0 %v73_v14 }
  0x35   :  { %386 = vmatpush3.msra.mxu1 %v170_v13  ;;  %350 = vmatprep.subr.mxu0 %v72_v16  ;;  %p491_p4 = por %p490_p3, %p489_p2 }
  0x36   :  { %387 = vmatprep.subr.mxu1 %v169_v15  ;;  %351 = vmatpush3.msra.mxu0 %v72_v16 }
  0x37   :  { %388 = vmatpush3.msra.mxu1 %v169_v15  ;;  %403 = vmatprep.mubr.f32.mxu1 %v62_v18  ;;  %p492_p5 = pnand %p491_p4, %p485_p1 }
  0x38   :  { %389 = vmatprep.subr.mxu1 %v168_v17  ;;  %352 = vmatprep.subr.mxu0 %v71_v19 }
  0x39   :  { %390 = vmatpush3.msra.mxu1 %v168_v17  ;;  %353 = vmatpush3.msra.mxu0 %v71_v19 }
  0x3a   :  { %391 = vmatprep.subr.mxu1 %v167_v20  ;;  %354 = vmatprep.subr.mxu0 %v70_v21 }
  0x3b   :  { %392 = vmatpush3.msra.mxu1 %v167_v20  ;;  %355 = vmatpush3.msra.mxu0 %v70_v21 }
  0x3c   :  { %393 = vmatprep.subr.mxu1 %v166_v22  ;;  %356 = vmatprep.subr.mxu0 %v69_v23 }
  0x3d   :  { %394 = vmatpush3.msra.mxu1 %v166_v22  ;;  %357 = vmatpush3.msra.mxu0 %v69_v23 }
  0x3e   :  { %395 = vmatprep.subr.mxu1 %v165_v24  ;;  %358 = vmatprep.subr.mxu0 %v68_v25 }
  0x3f   :  { %396 = vmatpush3.msra.mxu1 %v165_v24  ;;  %359 = vmatpush3.msra.mxu0 %v68_v25 }
  0x40   :  { %397 = vmatprep.subr.mxu1 %v164_v26  ;;  %360 = vmatprep.subr.mxu0 %v67_v27 }
  0x41   :  { %398 = vmatpush3.msra.mxu1 %v164_v26  ;;  %361 = vmatpush3.msra.mxu0 %v67_v27 }
  0x42   :  { %399 = vmatprep.subr.mxu1 %v163_v28  ;;  %362 = vmatprep.subr.mxu0 %v66_v29 }
  0x43   :  { %400 = vmatpush3.msra.mxu1 %v163_v28  ;;  %363 = vmatpush3.msra.mxu0 %v66_v29 }
  0x44   :  { %401 = vmatprep.subr.mxu1 %v162_v30  ;;  %364 = vmatprep.subr.mxu0 %v65_v31 }
  0x45   :  { %402 = vmatpush3.msra.mxu1 %v162_v30  ;;  %365 = vmatpush3.msra.mxu0 %v65_v31 }
  0x46   :  { %404 = vmatmul.mubr.f32.vlgmr.msra.gmra.mxu1 %v63_v32  ;;  %366 = vmatprep.subr.mxu0 %v64_v33 }
  0x47   :  { %368 = vmatprep.mubr.f32.mxu0 %v62_v18  ;;  %367 = vmatpush3.msra.mxu0 %v64_v33 }
  0x48   :  { %369 = vmatmul.mubr.f32.vlgmr.msra.gmra.mxu0 %v63_v32 }
 0x106   :  { %v405_v35 = vpop.f32.mrf.mxu1 }
 0x107   :  { %v257_v36 = vadd.f32 %v405_v35, %v297_v34 }
 0x108   :  { %v251_v37 = vpop.f32.mrf.mxu1  ;;  %v370_v41 = vpop.f32.mrf.mxu0 }
 0x109   :  { %v299_v38 = vmul.f32 -1.442695, %v257_v36  ;;  %v252_v39 = vadd.f32 %v297_v34, %v251_v37  ;;  %v159_v43 = vadd.f32 %v370_v41, %v296_v42 }
 0x10a   :  { %v153_v44 = vpop.f32.mrf.mxu0 }
 0x10b   :  { %412 = vpow2.f32 %v299_v38  ;;  %v298_v40 = vmul.f32 -1.442695, %v252_v39  ;;  %v154_v46 = vadd.f32 %v296_v42, %v153_v44 }
 0x10d   :  { %414 = vpow2.f32 %v298_v40 }
 0x10e   :  { %416 = vtanh.f32 %v159_v43 }
 0x118   :  { %v413_v45 = vpop.eup %412 }
 0x119   :  { %v267_v47 = vadd.f32 1.0, %v413_v45 }
 0x11a   :  { %v415_v48 = vpop.eup %414 }
 0x11b   :  { %418 = vrcp.f32 %v267_v47  ;;  %v266_v49 = vadd.f32 1.0, %v415_v48  ;;  %v417_v50 = vpop.eup %416 }
 0x11c   :  { %420 = vtanh.f32 %v154_v46 }
 0x11d   :  { %422 = vrcp.f32 %v266_v49 }
 0x128   :  { %v419_v51 = vpop.eup %418 }
 0x129   :  { %v421_v52 = vpop.eup %420  ;;  %v275_v53 = vmul.f32 %v419_v51, %v417_v50 }
 0x12a   :  { %v423_v54 = vpop.eup %422 }
 0x12b   :  { %v274_v55 = vmul.f32 %v423_v54, %v421_v52  ;;  %277 = vst [vmem:[#allocation8 + $0x8] sm:$0xff] %v275_v53 }
 0x12d   :  { %276 = vst [vmem:[#allocation8] sm:$0xff] %v274_v55 }
 0x12e   :  { %495 = shalt.err (!%p492_p5)
}
 0x12f   :  { %289 = dma.vmem_to_hbm [thread:$0]  %s284_s11, 256, %s581_s5, [#allocation4], %s512_s23, %s512_s23, %s513_s24  }
 0x130   :  { %508 = dma.done.wait [#allocation4], 256  }
 0x131   :  { %509 = vsyncadd [#allocation4], 4294967040 }
 0x132   :  { %293 = vsyncpa [#allocation3], 1 }
 0x133   :  { %294 = vsyncpa [#allocation6], 1 }
 0x134   :  { %295 = vsyncpa [#allocation4], 1 }

</bundles_post_ra>
